<compile_context>
chip_gen: v7x
topology: tpu7x:2x2x1
jax: 0.10.0
libtpu: 0.0.40
codegen_flags: <defaults>
</compile_context>

<pallas_src>
import jax
import jax.numpy as jnp
from jax.experimental import pallas as pl
from jax.experimental.pallas import tpu as pltpu

_LANE = 128
_SUB = 8


def _log_stft_mag_loss_kernel(x_ref, y_ref, o_ref, acc_ref):
    i = pl.program_id(1)  # reduction ("arbitrary") axis over row tiles

    # Init the per-core vector accumulator on the first reduction step.
    @pl.when(i == 0)
    def _():
        acc_ref[...] = jnp.zeros_like(acc_ref)

    # Hot path: cast -> log (EUP) -> abs-diff (VPU) -> elementwise vreg adds.
    x = x_ref[...].astype(jnp.float32)
    y = y_ref[...].astype(jnp.float32)
    diff = jnp.abs(jnp.log(y) - jnp.log(x))
    tr, lane = diff.shape
    # (tr, 128) -> (tr//8, 8, 128); sum over leading axis = pure VPU adds into
    # one (8, 128) vreg accumulator (no XLU work in the steady state).
    acc_ref[...] += diff.reshape(tr // _SUB, _SUB, lane).sum(axis=0)

    # Epilogue: dump the raw per-lane/sublane partials for this core.
    @pl.when(i == pl.num_programs(1) - 1)
    def _():
        o_ref[0] = acc_ref[...]


def log_stft_magnitude_loss(x_mag, y_mag, *, tile_rows=1024, num_cores=2):
    """Pallas equivalent of LogSTFTMagnitudeLoss.forward(x_mag, y_mag).

    Args:
        x_mag: (B, frames, freq) predicted magnitude spectrogram (positive).
        y_mag: (B, frames, freq) groundtruth magnitude spectrogram (positive).
    Returns:
        Scalar float32 loss = mean(|log(y_mag) - log(x_mag)|).
    """
    assert x_mag.shape == y_mag.shape
    total_n = int(x_mag.size)

    # Lane-dense layout: flatten everything and view as (rows, 128).
    rows_raw = pl.cdiv(total_n, _LANE)
    # Rows per tile: multiple of 8 sublanes, capped at tile_rows.
    tr = min(int(tile_rows), ((rows_raw + _SUB - 1) // _SUB) * _SUB)
    # Pad rows so the range splits evenly into num_cores * steps tiles.
    chunk = num_cores * tr
    rows_pad = ((rows_raw + chunk - 1) // chunk) * chunk
    n_pad = rows_pad * _LANE
    steps = rows_pad // chunk

    def _prep(a):
        flat = a.reshape(-1)
        pad = n_pad - total_n
        if pad:
            # Pad with 1.0 so |log(1) - log(1)| == 0 (no contribution).
            flat = jnp.concatenate([flat, jnp.full((pad,), 1, dtype=flat.dtype)])
        return flat.reshape(rows_pad, _LANE)

    x2 = _prep(x_mag)
    y2 = _prep(y_mag)

    itemsize = jnp.dtype(x2.dtype).itemsize
    cost = pl.CostEstimate(
        flops=3 * n_pad,
        transcendentals=2 * n_pad,
        bytes_accessed=2 * n_pad * itemsize + num_cores * _SUB * _LANE * 4,
    )

    def in_map(c, i):
        return (c * steps + i, 0)

    partials = pl.pallas_call(
        _log_stft_mag_loss_kernel,
        out_shape=jax.ShapeDtypeStruct((num_cores, _SUB, _LANE), jnp.float32),
        grid_spec=pltpu.PrefetchScalarGridSpec(
            num_scalar_prefetch=0,
            grid=(num_cores, steps),
            in_specs=[
                pl.BlockSpec((tr, _LANE), in_map),
                pl.BlockSpec((tr, _LANE), in_map),
            ],
            out_specs=pl.BlockSpec((1, _SUB, _LANE), lambda c, i: (c, 0, 0)),
            scratch_shapes=[pltpu.VMEM((_SUB, _LANE), jnp.float32)],
        ),
        compiler_params=pltpu.CompilerParams(
            # Leading axis shards across TensorCores (v7x); row-tile axis is a
            # reduction into the per-core accumulator.
            dimension_semantics=("parallel", "arbitrary"),
            vmem_limit_bytes=32 * 1024 * 1024,
        ),
        cost_estimate=cost,
    )(x2, y2)

    # Final tiny reduction (num_cores*8*128 partials) + mean normalization.
    return jnp.sum(partials) / jnp.float32(total_n)


if __name__ == "__main__":
    key = jax.random.PRNGKey(0)

    # Small shapes consistent with (B, #frames, #freq_bins).
    B, FRAMES, FREQ = 2, 8, 16
    kx, ky = jax.random.split(key)
    # Magnitudes must be strictly positive for log().
    x_mag = jnp.abs(jax.random.normal(kx, (B, FRAMES, FREQ), dtype=jnp.float32)) + 1e-3
    y_mag = jnp.abs(jax.random.normal(ky, (B, FRAMES, FREQ), dtype=jnp.float32)) + 1e-3

    loss = log_stft_magnitude_loss(x_mag, y_mag)
    jax.block_until_ready(loss)
    ref = jnp.mean(jnp.abs(jnp.log(y_mag) - jnp.log(x_mag)))
    assert jnp.allclose(loss, ref, rtol=1e-5, atol=1e-6), (loss, ref)

    # Second check with an odd freq-bin count (exercises lane padding path).
    B2, FRAMES2, FREQ2 = 2, 30, 65
    kx2, ky2 = jax.random.split(jax.random.PRNGKey(1))
    x2 = jnp.abs(jax.random.normal(kx2, (B2, FRAMES2, FREQ2), dtype=jnp.float32)) + 1e-3
    y2 = jnp.abs(jax.random.normal(ky2, (B2, FRAMES2, FREQ2), dtype=jnp.float32)) + 1e-3
    loss2 = log_stft_magnitude_loss(x2, y2)
    jax.block_until_ready(loss2)
    ref2 = jnp.mean(jnp.abs(jnp.log(y2) - jnp.log(x2)))
    assert jnp.allclose(loss2, ref2, rtol=1e-5, atol=1e-6), (loss2, ref2)

    # Larger shape that spans multiple row tiles and both grid cores.
    B3, FRAMES3, FREQ3 = 4, 240, 513
    kx3, ky3 = jax.random.split(jax.random.PRNGKey(2))
    x3 = jnp.abs(jax.random.normal(kx3, (B3, FRAMES3, FREQ3), dtype=jnp.float32)) + 1e-3
    y3 = jnp.abs(jax.random.normal(ky3, (B3, FRAMES3, FREQ3), dtype=jnp.float32)) + 1e-3
    loss3 = log_stft_magnitude_loss(x3, y3)
    jax.block_until_ready(loss3)
    ref3 = jnp.mean(jnp.abs(jnp.log(y3) - jnp.log(x3)))
    assert jnp.allclose(loss3, ref3, rtol=1e-5, atol=1e-6), (loss3, ref3)

    print("KERNEL_OK")
</pallas_src>

<mosaic_0001>
module attributes {stable_mosaic.version = 11 : i64} {
  func.func @_log_stft_mag_loss_kernel(%arg0: i32, %arg1: i32, %arg2: memref<8x128xf32, #tpu.memory_space<vmem>>, %arg3: memref<8x128xf32, #tpu.memory_space<vmem>>, %arg4: memref<1x8x128xf32, #tpu.memory_space<vmem>>, %arg5: memref<8x128xf32, #tpu.memory_space<vmem>>) attributes {dimension_semantics = [#tpu.dimension_semantics<parallel>, #tpu.dimension_semantics<arbitrary>], iteration_bounds = array<i64: 2, 1>, scalar_prefetch = 0 : i64, scratch_operands = 1 : i64, tpu.core_type = #tpu.core_type<tc>, window_params = [{transform_indices = @transform_0, window_bounds = array<i64: 8, 128>}, {transform_indices = @transform_1, window_bounds = array<i64: 8, 128>}, {transform_indices = @transform_2, window_bounds = array<i64: 1, 8, 128>}]} {
    %c0_i32 = arith.constant 0 : i32
    %0 = arith.cmpi eq, %arg1, %c0_i32 : i32
    %1 = arith.extui %0 : i1 to i32
    %c0_i32_0 = arith.constant 0 : i32
    %2 = arith.cmpi ne, %1, %c0_i32_0 : i32
    scf.if %2 {
      %cst_10 = arith.constant 0.000000e+00 : f32
      %17 = vector.broadcast %cst_10 : f32 to vector<8x128xf32>
      %c0_11 = arith.constant 0 : index
      %c0_12 = arith.constant 0 : index
      %18 = vector.load %arg5[%c0_11, %c0_12] : memref<8x128xf32, #tpu.memory_space<vmem>>, vector<8x128xf32>
      tpu.vector_store %arg5[%c0_11, %c0_12], %17 {strides = array<i32>} : memref<8x128xf32, #tpu.memory_space<vmem>>, vector<8x128xf32>,
    } else {
    }
    %c0 = arith.constant 0 : index
    %c0_1 = arith.constant 0 : index
    %3 = vector.load %arg2[%c0, %c0_1] : memref<8x128xf32, #tpu.memory_space<vmem>>, vector<8x128xf32>
    %c0_2 = arith.constant 0 : index
    %c0_3 = arith.constant 0 : index
    %4 = vector.load %arg3[%c0_2, %c0_3] : memref<8x128xf32, #tpu.memory_space<vmem>>, vector<8x128xf32>
    %5 = math.log %4 : vector<8x128xf32>
    %6 = math.log %3 : vector<8x128xf32>
    %7 = arith.subf %5, %6 : vector<8x128xf32>
    %8 = math.absf %7 : vector<8x128xf32>
    %c0_4 = arith.constant 0 : index
    %c0_5 = arith.constant 0 : index
    %9 = vector.load %arg5[%c0_4, %c0_5] : memref<8x128xf32, #tpu.memory_space<vmem>>, vector<8x128xf32>
    %10 = vector.shape_cast %8 : vector<8x128xf32> to vector<1x8x128xf32>
    %cst = arith.constant dense<0.000000e+00> : vector<8x128xf32>
    %11 = vector.multi_reduction <add>, %10, %cst [0] : vector<1x8x128xf32> to vector<8x128xf32>
    %12 = arith.addf %9, %11 : vector<8x128xf32>
    %c0_6 = arith.constant 0 : index
    %c0_7 = arith.constant 0 : index
    %13 = vector.load %arg5[%c0_6, %c0_7] : memref<8x128xf32, #tpu.memory_space<vmem>>, vector<8x128xf32>
    tpu.vector_store %arg5[%c0_6, %c0_7], %12 {strides = array<i32>} : memref<8x128xf32, #tpu.memory_space<vmem>>, vector<8x128xf32>,
    %c0_i32_8 = arith.constant 0 : i32
    %14 = arith.cmpi eq, %arg1, %c0_i32_8 : i32
    %15 = arith.extui %14 : i1 to i32
    %c0_i32_9 = arith.constant 0 : i32
    %16 = arith.cmpi ne, %15, %c0_i32_9 : i32
    scf.if %16 {
      %c0_10 = arith.constant 0 : index
      %c0_11 = arith.constant 0 : index
      %17 = vector.load %arg5[%c0_10, %c0_11] : memref<8x128xf32, #tpu.memory_space<vmem>>, vector<8x128xf32>
      %c0_12 = arith.constant 0 : index
      %c0_13 = arith.constant 0 : index
      %c0_14 = arith.constant 0 : index
      %18 = vector.load %arg4[%c0_12, %c0_13, %c0_14] : memref<1x8x128xf32, #tpu.memory_space<vmem>>, vector<1x8x128xf32>
      %19 = vector.shape_cast %18 : vector<1x8x128xf32> to vector<8x128xf32>
      %20 = vector.shape_cast %17 : vector<8x128xf32> to vector<1x8x128xf32>
      tpu.vector_store %arg4[%c0_12, %c0_13, %c0_14], %20 {strides = array<i32>} : memref<1x8x128xf32, #tpu.memory_space<vmem>>, vector<1x8x128xf32>,
    } else {
    }
    return
  }
  func.func @transform_0(%arg0: i32, %arg1: i32) -> (i32, i32) {
    %c1_i32 = arith.constant 1 : i32
    %0 = arith.muli %arg0, %c1_i32 : i32
    %1 = arith.addi %0, %arg1 : i32
    %c0_i32 = arith.constant 0 : i32
    %c0_i32_0 = arith.constant 0 : i32
    return %1, %c0_i32 : i32, i32
  }
  func.func @transform_1(%arg0: i32, %arg1: i32) -> (i32, i32) {
    %c1_i32 = arith.constant 1 : i32
    %0 = arith.muli %arg0, %c1_i32 : i32
    %1 = arith.addi %0, %arg1 : i32
    %c0_i32 = arith.constant 0 : i32
    %c0_i32_0 = arith.constant 0 : i32
    return %1, %c0_i32 : i32, i32
  }
  func.func @transform_2(%arg0: i32, %arg1: i32) -> (i32, i32, i32) {
    %c0_i32 = arith.constant 0 : i32
    %c0_i32_0 = arith.constant 0 : i32
    %c0_i32_1 = arith.constant 0 : i32
    return %arg0, %c0_i32, %c0_i32_0 : i32, i32, i32
  }
}

</mosaic_0001>

<bundles_post_ra>
// kernel: tpu_custom_call.1
= control target key start
LH: loop header
LB: loop body
LE: loop exit
PB: predicated region body
PF: predicated region fallthrough
CT: control target
= control target key end

     0   :  { %7 = vsyncpa [#allocation4], 0  ;;  %s828_s0 = inlined_call_operand.hbm [shape: f32[16,128], index: 0, kind: input, shape index: {}]   ;;  %s829_s1 = inlined_call_operand.hbm [shape: f32[16,128], index: 1, kind: input, shape index: {}]   ;;  %s830_s2 = inlined_call_operand.hbm [shape: f32[2,8,128], index: 2, kind: output, shape index: {}]  }
   0x1   :  { %9 = vsyncpa [#allocation4 + $0x1], 0 }
   0x2   :  { %10 = vsyncpa [#allocation7], 0 }
   0x3   :  { %12 = vsyncpa [#allocation7 + $0x1], 0 }
   0x4   :  { %13 = vsyncpa [#allocation5], 0 }
   0x5   :  { %15 = vsyncpa [#allocation5 + $0x1], 0  ;;  %s608_s9 = smov 0   ;;  %s610_s10 = smov 0  }
   0x6   :  { %s612_s11 = smov 0   ;;  %s614_s12 = smov 0  }
   0x7   :  { %s616_s13 = smov 0   ;;  %s618_s14 = smov 0  }
   0x8 LB: > { %s355_s15 = sadd.s32 4294967295, %s588_s14   ;;  %s356_s16 = sadd.s32 4294967294, %s588_s14   ;;  %s588_s14 = sphi %s618_s14, %s21_s14   ;;  %s584_s13 = sphi %s616_s13, %s850_s13   ;;  %s580_s12 = sphi %s614_s12, %s849_s12   ;;  %s576_s11 = sphi %s612_s11, %s848_s11   ;;  %s572_s10 = sphi %s610_s10, %s847_s10   ;;  %s568_s9 = sphi %s608_s9, %s846_s9  }
   0x9   : > { %s33_s17 = sadd.s32 1, %s584_s13  ;;  %s42_s18 = sadd.s32 1, %s576_s11 }
   0xa   : > { %p35_p0 = scmp.ge.s32.totalorder %s33_s17, 2  ;;  %p49_p1 = scmp.ne.s32.totalorder %s576_s11, %s572_s10 }
   0xb   : > { %p50_p2 = scmp.eq.s32.totalorder %s588_s14, 0  ;;  %p55_p3 = scmp.ne.s32.totalorder %s572_s10, %s568_s9 }
   0xc   : > { %s852_s17 = smov (%p35_p0, %s33_s17), 0  ;;  %p56_p5 = scmp.eq.s32.totalorder %s355_s15, 0 }
   0xd   : > { %p649_p4 = por %p50_p2, %p49_p1  ;;  %s39_s20 = ssub.s32 %s584_s13, %s852_s17 }
   0xe   : > { %p107_p6 = scmp.eq.s32.totalorder %s355_s15, 1  ;;  %p40_p7 = scmp.eq.s32.totalorder %s39_s20, 0 }
   0xf   : > { %p655_p8 = por %p56_p5, %p55_p3  ;;  %p113_p10 = scmp.eq.s32.totalorder %s356_s16, 1 }
  0x10   : > { %p659_p9 = por %p107_p6, %p49_p1  ;;  %p388_p13 = scmp.lt.s32.totalorder %s588_s14, 2 }
  0x11   : > { %s834_s21 = scalar_select %p655_p8, 1, 0 }
  0x12   : > { %s835_s22 = scalar_select %p659_p9, 1, 0 }
  0x13   : > { %s664_s23 = scalar_select %p40_p7, %s576_s11, %s42_s18  }
  0x14   : > { %p666_p11 = por %p113_p10, %p55_p3  ;;  %s673_s25 = sand.u32 1, %s576_s11  }
  0x15   : > { %s359_s26 = sshll.u32 %s673_s25, 3  ;;  %s360_s27 = sshll.u32 %s584_s13, 7 }
  0x16   : > { %s836_s24 = scalar_select %p666_p11, 1, 0 }
  0x17   : > { %s682_s30 = scalar_lea.hbm %s828_s0, %s360_s27  ;;  %s137_s3 = scalar_lea.vmem [#allocation3], %s359_s26 }
  0x18   : > { %s145_s4 = sshll.u32 %s137_s3, 4  ;;  %p690_p0 = pnand %p388_p13, %p649_p4  ;;  %s686_s4 = int_to_ptr.vmem [resolvable:$true] %s145_s4 }
  0x19   : > { %s134_s6 = scalar_lea.sflag [#allocation4], %s673_s25  ;;  %s442_s7 = scalar_lea.hbm %s682_s30, 128 }
  0x1a   : > { %p443_p3 = scmp.ne.s32.totalorder %s682_s30, %s442_s7  ;;  %p444_p5 = pneg %p690_p0 }
  0x1b   : > { %s447_s16 = scalar_lea.hbm %s828_s0, 256  ;;  %p448_p4 = scmp.lt.u32.totalorder %s682_s30, %s828_s0 }
  0x1c   : > { %p445_p6 = pnand %p444_p5, %p443_p3  ;;  %p449_p10 = scmp.lt.u32.totalorder %s447_s16, %s442_s7 }
  0x1d   : > { %p451_p12 = scmp.lt.u32.totalorder %s442_s7, %s682_s30 }
  0x1e   : > { %p446_p7 = pneg %p445_p6  ;;  %p450_p13 = por %p449_p10, %p448_p4 }
  0x20   : > { %p452_p1 = por %p451_p12, %p450_p13 }
  0x22   : > { %p453_p2 = pnand %p452_p1, %p446_p7 }
  0x24   : > { %456 = shalt.err (!%p453_p2)
}
  0x25   : > { %s457_s20 = scalar_lea.vmem %s686_s4, 128  ;;  %s590_s28 = smov [#allocation3]  }
  0x26   : > { %p458_p3 = scmp.ne.s32.totalorder %s686_s4, %s457_s20  ;;  %s462_s29 = sshll.u32 %s590_s28, 4  ;;  %s463_s29 = int_to_ptr.vmem [resolvable:$false] %s462_s29 }
  0x27   : > { %s464_s3 = scalar_lea.vmem %s463_s29, 256  ;;  %p465_p9 = scmp.lt.s32.totalorder %s686_s4, %s463_s29 }
  0x28   : > { %p460_p6 = pnand %p458_p3, %p444_p5  ;;  %p466_p4 = scmp.lt.s32.totalorder %s464_s3, %s457_s20 }
  0x2a   : > { %p461_p11 = pneg %p460_p6  ;;  %p467_p10 = por %p466_p4, %p465_p9 }
  0x2c   : > { %p468_p12 = pnand %p467_p10, %p461_p11 }
  0x2e   : > { %471 = shalt.err (!%p468_p12)
}
  0x2f   : > { %380 = dma.hbm_to_vmem [thread:$0]  (!%p690_p0), %s682_s30, 128, %s686_s4, %s134_s6  }
  0x30   : > { %p838_p1 = scmp.lt.s32.totalorder %s588_s14, 3  ;;  %p839_p2 = scmp.ge.s32.totalorder %s588_s14, 1 }
  0x31   : > { %s735_s16 = scalar_lea.hbm %s829_s1, %s360_s27  ;;  %s156_s18 = scalar_lea.vmem [#allocation6], %s359_s26 }
  0x32   : > { %p726_p7 = pnand %p839_p2, %p838_p1  ;;  %s164_s19 = sshll.u32 %s156_s18, 4  ;;  %s165_s19 = int_to_ptr.vmem [resolvable:$true] %s164_s19 }
  0x33   : > { %s153_s30 = scalar_lea.sflag [#allocation7], %s673_s25  ;;  %s472_s4 = scalar_lea.hbm %s735_s16, 128 }
  0x34   : > { %s840_s7 = scalar_select %p726_p7, 1, 0 }
  0x35   : > { %p473_p9 = scmp.ne.s32.totalorder %s735_s16, %s472_s4  ;;  %s477_s27 = scalar_lea.hbm %s829_s1, 256 }
  0x36   : > { %p478_p3 = scmp.lt.u32.totalorder %s735_s16, %s829_s1  ;;  %p479_p6 = scmp.lt.u32.totalorder %s477_s27, %s472_s4 }
  0x37   : > { %p475_p11 = pnand %p473_p9, %p444_p5  ;;  %p481_p10 = scmp.lt.u32.totalorder %s472_s4, %s735_s16 }
  0x38   : > { %p480_p4 = por %p479_p6, %p478_p3 }
  0x39   : > { %p476_p13 = pneg %p475_p11 }
  0x3a   : > { %p482_p12 = por %p481_p10, %p480_p4 }
  0x3c   : > { %p483_p1 = pnand %p482_p12, %p476_p13 }
  0x3e   : > { %486 = shalt.err (!%p483_p1)
}
  0x3f   : > { %s487_s25 = scalar_lea.vmem %s165_s19, 128  ;;  %s591_s26 = smov [#allocation6]  }
  0x40   : > { %p488_p2 = scmp.ne.s32.totalorder %s165_s19, %s487_s25  ;;  %s492_s3 = sshll.u32 %s591_s26, 4  ;;  %s493_s3 = int_to_ptr.vmem [resolvable:$false] %s492_s3 }
  0x41   : > { %s494_s8 = scalar_lea.vmem %s493_s3, 256  ;;  %p495_p8 = scmp.lt.s32.totalorder %s165_s19, %s493_s3 }
  0x42   : > { %p490_p9 = pnand %p488_p2, %p444_p5  ;;  %p496_p7 = scmp.lt.s32.totalorder %s494_s8, %s487_s25 }
  0x44   : > { %p491_p11 = pneg %p490_p9  ;;  %p497_p3 = por %p496_p7, %p495_p8 }
  0x46   : > { %p498_p6 = pnand %p497_p3, %p491_p11 }
  0x48   : > { %501 = shalt.err (!%p498_p6)
}
  0x49   : > { %383 = dma.hbm_to_vmem [thread:$0]  (!%p690_p0), %s735_s16, 128, %s165_s19, %s153_s30  }
  0x4a   : > { %p841_p13 = scmp.ne.s32.totalorder %s840_s7, 0 }
  0x4b   : > { %s762_s15 = sand.u32 (!%p841_p13), 1, %s572_s10   ;;  %p842_p5 = scmp.ne.s32.totalorder (!%p841_p13), %s834_s21, 0 }
  0x4c   : > { %173 = sbr.rel (%p841_p13) target bundleno = 119 (0x77), region = 28  ;;  %s364_s18 = sshll.u32 (!%p841_p13), %s762_s15, 3 }
  0x4d   : > { %s176_s4 = scalar_lea.sflag (!%p841_p13), [#allocation4], %s762_s15  ;;  %s179_s6 = scalar_lea.vmem (!%p841_p13), [#allocation3], %s364_s18 }
  0x53   : > { %555 = dma.done.wait (%p842_p5), %s176_s4, 128  }
  0x54   : > { %557 = vsyncadd (%p842_p5), %s176_s4, 4294967168  ;;  %s185_s5 = scalar_lea.sflag [#allocation7], %s762_s15  ;;  %s188_s16 = scalar_lea.vmem [#allocation6], %s364_s18 }
  0x55   : > { %559 = dma.done.wait (%p842_p5), %s185_s5, 128  }
  0x56   : > { %561 = vsyncadd (%p842_p5), %s185_s5, 4294967168  ;;  %v221_v0 = vld [vmem:[%s179_s6] sm:$0xff]  ;;  %v222_v1 = vld [vmem:[%s188_s16] sm:$0xff]  ;;  %s213_s7 = scalar_lea.vmem [#allocation8], %s364_s18  ;;  %s368_s30 = sshll.u32 %s580_s12, 7 }
  0x57   : > { %438 = vlog2.f32 %v222_v1  ;;  %s252_s19 = sshll.u32 %s213_s7, 4  ;;  %s781_s27 = scalar_lea.hbm %s830_s2, %s368_s30  ;;  %s776_s19 = int_to_ptr.vmem [resolvable:$true] %s252_s19 }
  0x58   : > { %440 = vlog2.f32 %v221_v0  ;;  %s239_s28 = scalar_lea.sflag [#allocation5], %s762_s15  ;;  %s502_s29 = scalar_lea.vmem %s776_s19, 128 }
  0x59   : > { %p503_p8 = scmp.ne.s32.totalorder %s776_s19, %s502_s29  ;;  %p843_p0 = scmp.ne.s32.totalorder %s835_s22, 0 }
  0x5a   : > { %s592_s12 = smov [#allocation8]  }
  0x5b   : > { %p504_p7 = pnand %p503_p8, %p843_p0  ;;  %s506_s25 = sshll.u32 %s592_s12, 4  ;;  %s507_s25 = int_to_ptr.vmem [resolvable:$false] %s506_s25 }
  0x5c   : > { %s508_s26 = scalar_lea.vmem %s507_s25, 256  ;;  %p509_p10 = scmp.lt.s32.totalorder %s776_s19, %s507_s25 }
  0x5d   : > { %p505_p4 = pneg %p504_p7  ;;  %p510_p12 = scmp.lt.s32.totalorder %s508_s26, %s502_s29 }
  0x5f   : > { %p511_p1 = por %p510_p12, %p509_p10 }
  0x61   : > { %v439_v2 = vpop.eup %438  ;;  %p512_p2 = pnand %p511_p1, %p505_p4 }
  0x62   : > { %v441_v3 = vpop.eup %440  ;;  %v224_v4 = vmul.f32 0.6931472, %v439_v2 }
  0x63   : > { %v226_v5 = vmul.f32 0.6931472, %v441_v3 }
  0x65   : > { %v227_v6 = vsub.f32 %v224_v4, %v226_v5 }
  0x67   : > { %v228_v7 = vand.u32 2147483647, %v227_v6 }
  0x69   : > { %237 = vst [vmem:[%s213_s7] sm:$0xff] %v228_v7 }
  0x6a   : > { %515 = shalt.err (!%p512_p2)
}
  0x6b   : > { %s516_s3 = scalar_lea.hbm %s781_s27, 128  ;;  %s520_s18 = scalar_lea.hbm %s830_s2, 256 }
  0x6c   : > { %p517_p9 = scmp.ne.s32.totalorder %s781_s27, %s516_s3  ;;  %p521_p6 = scmp.lt.u32.totalorder %s781_s27, %s830_s2 }
  0x6d   : > { %p522_p13 = scmp.lt.u32.totalorder %s520_s18, %s516_s3  ;;  %p524_p8 = scmp.lt.u32.totalorder %s516_s3, %s781_s27 }
  0x6e   : > { %p518_p11 = pnand %p517_p9, %p843_p0 }
  0x6f   : > { %p523_p5 = por %p522_p13, %p521_p6 }
  0x70   : > { %p519_p3 = pneg %p518_p11 }
  0x71   : > { %p525_p7 = por %p524_p8, %p523_p5 }
  0x73   : > { %p526_p4 = pnand %p525_p7, %p519_p3 }
  0x75   : > { %529 = shalt.err (!%p526_p4)
}
  0x76   : > { %375 = dma.vmem_to_hbm [thread:$0]  (%p843_p0), %s776_s19, 128, %s781_s27, %s239_s28  }
  0x77 PF: > { %s264_s5 = sand.u32 1, %s568_s9   ;;  %p844_p10 = scmp.ne.s32.totalorder %s836_s24, 0 }
  0x78   : > { %p845_p12 = scmp.ge.s32.totalorder %s588_s14, 2  ;;  %s265_s16 = scalar_lea.sflag [#allocation5], %s264_s5 }
  0x7a   : > { %p385_p1 = pnand %p845_p12, %p844_p10 }
  0x7c   : > { %563 = dma.done.wait (!%p385_p1), %s265_s16, 128  }
  0x7d   : > { %565 = vsyncadd (!%p385_p1), %s265_s16, 4294967168  ;;  %s21_s14 = sadd.s32 1, %s588_s14   ;;  %s846_s9 = smov %s572_s10 }
  0x7e   : > { %p18_p2 = scmp.ge.s32.totalorder %s21_s14, 4   ;;  %s847_s10 = smov %s576_s11 }
  0x7f   : > { %s848_s11 = smov %s664_s23  ;;  %s849_s12 = smov %s584_s13 }
  0x80   : > { %s850_s13 = smov %s852_s17  ;;  %20 = sbr.rel (!%p18_p2) target bundleno = 8 (0x8), region = 94 }
  0x87   :  { %270 = vsyncpa [#allocation4], 1 }
  0x88   :  { %272 = vsyncpa [#allocation4 + $0x1], 1 }
  0x89   :  { %273 = vsyncpa [#allocation7], 1 }
  0x8a   :  { %275 = vsyncpa [#allocation7 + $0x1], 1 }
  0x8b   :  { %276 = vsyncpa [#allocation5], 1 }
  0x8c   :  { %278 = vsyncpa [#allocation5 + $0x1], 1 }

</bundles_post_ra>
